<compile_context>
chip_gen: v6e
topology: v6e:2x2x1
jax: 0.10.0
libtpu: 0.0.40
codegen_flags: <defaults>
</compile_context>

<pallas_src>
import numpy as np
import jax
import jax.numpy as jnp
from jax.experimental import pallas as pl
from jax.experimental.pallas import tpu as pltpu


# ---------------------------------------------------------------------------
# Parameter setup (plain numpy): replicate Resizer's cubic contributions
# ---------------------------------------------------------------------------
def _cubic(x):
    absx = np.abs(x)
    absx2 = absx ** 2
    absx3 = absx ** 3
    return ((1.5 * absx3 - 2.5 * absx2 + 1) * (absx <= 1) +
            (-0.5 * absx3 + 2.5 * absx2 - 4 * absx + 2) * ((1 < absx) & (absx <= 2)))


def _contributions(in_length, out_length, scale, kernel, kernel_width, antialiasing):
    fixed_kernel = (lambda arg: scale * kernel(scale * arg)) if antialiasing else kernel
    kernel_width = kernel_width / scale if antialiasing else kernel_width

    out_coords = np.arange(1, out_length + 1)
    shifted = out_coords - (out_length - in_length * scale) / 2.0
    match = shifted / scale + 0.5 * (1 - 1.0 / scale)
    left = np.floor(match - kernel_width / 2.0)
    p = int(np.ceil(kernel_width)) + 2

    fov = (np.expand_dims(left, 1) + np.arange(p) - 1).astype(np.int64)
    weights = fixed_kernel(np.expand_dims(match, 1) - fov - 1)
    sw = np.sum(weights, axis=1)
    sw[sw == 0] = 1.0
    weights = weights / np.expand_dims(sw, 1)

    # reflection padding trick at the boundaries (same as Resizer)
    mirror = np.concatenate((np.arange(in_length), np.arange(in_length - 1, -1, -1)))
    fov = mirror[np.mod(fov, mirror.shape[0])]

    nz = np.nonzero(np.any(weights, axis=0))[0]
    return weights[:, nz], fov[:, nz]


def _resize_matrix(in_length, out_length, scale, antialiasing=True):
    """Dense (out_length, in_length) matrix equivalent to one Resizer pass along a dim."""
    w, fov = _contributions(in_length, out_length, scale, _cubic, 4.0, antialiasing)
    r = np.zeros((out_length, in_length), dtype=np.float64)
    for i in range(out_length):
        for k in range(w.shape[1]):
            r[i, fov[i, k]] += w[i, k]
    return r.astype(np.float32)


def build_sr_params(H, W, scale_factor, antialiasing=True):
    """Precompute (once) the fused resize matrix, folded bias, and reference matrices."""
    scale = 1.0 / scale_factor
    H_out = int(np.ceil(H * scale))
    W_out = int(np.ceil(W * scale))
    r_h = _resize_matrix(H, H_out, scale, antialiasing)     # (H_out, H)
    r_w = _resize_matrix(W, W_out, scale, antialiasing)     # (W_out, W)

    # y_flat = x_flat @ K^T (+bias), K = kron(R_h, R_w), row-major flattening.
    K = np.kron(r_h.astype(np.float64), r_w.astype(np.float64))      # (H_out*W_out, H*W)
    bias = K @ np.ones((H * W,), np.float64) - 1.0                   # exact affine fold

    hw_out = H_out * W_out
    # Zero-pad the fused output dim to >=128 lanes so every output store is unmasked.
    hw_out_pad = hw_out if hw_out >= 128 else 128
    kT_pad = np.zeros((H * W, hw_out_pad), np.float32)
    kT_pad[:, :hw_out] = K.T.astype(np.float32)

    has_bias = bool(np.max(np.abs(bias)) > 1e-6)   # analytically 0 (rows normalized)
    bias_pad = None
    if has_bias:
        b = np.zeros((1, hw_out_pad), np.float32)
        b[0, :hw_out] = bias.astype(np.float32)
        bias_pad = jnp.asarray(b)

    return dict(
        kT=jnp.asarray(kT_pad),      # (H*W, hw_out_pad)
        bias=bias_pad,               # None (typical) or (1, hw_out_pad)
        h_out=H_out, w_out=W_out, hw_out_pad=hw_out_pad,
        r_h=jnp.asarray(r_h), r_w=jnp.asarray(r_w),
    )


# ---------------------------------------------------------------------------
# Padding-aware block-row selection (no divisor requirement on B*C)
# ---------------------------------------------------------------------------
def _pick_block_rows(n, hw_in, hw_out_pad, itemsize, budget_bytes=20 << 20):
    pad8 = lambda v: -(-v // 8) * 8
    pad128 = lambda v: -(-v // 128) * 128
    lanes_in = pad128(hw_in)
    lanes_out = pad128(hw_out_pad)
    fixed = 2 * pad8(hw_in) * lanes_out * 4             # double-buffered weight block

    def resident(tb):
        in_b = pad8(tb) * lanes_in * itemsize           # input block
        out_b = pad8(tb) * lanes_out * itemsize          # output block
        inter = pad8(tb) * lanes_out * 4                 # f32 matmul result
        return fixed + 2 * (in_b + out_b) + inter        # x2 double-buffering for in/out

    n8 = pad8(n)
    tb = 8
    while tb * 2 <= n8 and resident(tb * 2) <= budget_bytes:
        tb *= 2
    # Keep >=4 grid steps when there is enough work (2-TC megacore + pipeline overlap).
    while tb > 8 and -(-n // tb) < 4 and n >= 32:
        tb //= 2
    return tb


# ---------------------------------------------------------------------------
# Pallas kernels: one lane-dense matmul per block of flattened planes
# ---------------------------------------------------------------------------
def _resize_kernel(x_ref, kT_ref, o_ref):
    o_ref[...] = jnp.dot(x_ref[...], kT_ref[...],
                         preferred_element_type=jnp.float32).astype(o_ref.dtype)


def _resize_kernel_bias(x_ref, kT_ref, bias_ref, o_ref):
    y = jnp.dot(x_ref[...], kT_ref[...], preferred_element_type=jnp.float32)
    o_ref[...] = (y + bias_ref[...]).astype(o_ref.dtype)


def super_resolution_operator(x, params):
    """Forward pass of SuperResolutionOperator with keep_shape=False (default)."""
    # TODO(synk): keep_shape=True path (F.interpolate bicubic upsample back) not implemented.
    B, C, H, W = x.shape
    kT, bias = params["kT"], params["bias"]
    H_out, W_out, hw_out_pad = params["h_out"], params["w_out"], params["hw_out_pad"]
    HW_in = H * W
    hw_out = H_out * W_out
    assert kT.shape == (HW_in, hw_out_pad)

    # TODO(synk): for large images the fused kron matrix becomes huge; a separable
    #             two-matmul kernel should be used instead of the fused path below.
    if kT.size * 4 > (256 << 20):
        raise NotImplementedError("fused resize matrix too large; see TODO above")

    N = B * C
    itemsize = int(np.dtype(x.dtype).itemsize)
    tb = _pick_block_rows(N, HW_in, hw_out_pad, itemsize)
    nb = -(-N // tb)
    N_pad = nb * tb

    xf = x.reshape(N, HW_in)                       # lane-dense input planes
    if N_pad != N:
        xf = jnp.pad(xf, ((0, N_pad - N), (0, 0)))

    in_specs = [
        pl.BlockSpec((tb, HW_in), lambda i: (i, 0)),
        pl.BlockSpec((HW_in, hw_out_pad), lambda i: (0, 0)),
    ]
    args = [xf, kT]
    kernel = _resize_kernel
    if bias is not None:
        in_specs.append(pl.BlockSpec((1, hw_out_pad), lambda i: (0, 0)))
        args.append(bias)
        kernel = _resize_kernel_bias

    flops = 2 * N_pad * HW_in * hw_out_pad
    bytes_accessed = (N_pad * (HW_in + hw_out_pad) + HW_in * hw_out_pad) * itemsize

    out = pl.pallas_call(
        kernel,
        out_shape=jax.ShapeDtypeStruct((N_pad, hw_out_pad), x.dtype),
        grid_spec=pltpu.PrefetchScalarGridSpec(
            num_scalar_prefetch=0,
            grid=(nb,),
            in_specs=in_specs,
            out_specs=pl.BlockSpec((tb, hw_out_pad), lambda i: (i, 0)),
        ),
        compiler_params=pltpu.CompilerParams(
            dimension_semantics=("parallel",),
            vmem_limit_bytes=48 * 1024 * 1024,
        ),
        cost_estimate=pl.CostEstimate(flops=flops, transcendentals=0,
                                      bytes_accessed=bytes_accessed),
    )(*args)

    # Pure layout plumbing: drop padded rows/columns and restore (B, C, H_out, W_out).
    return out[:N, :hw_out].reshape(B, C, H_out, W_out)


if __name__ == "__main__":
    B, C, H, W = 2, 4, 16, 16
    scale_factor = 4

    key = jax.random.PRNGKey(0)
    x = jax.random.uniform(key, (B, C, H, W), jnp.float32, minval=-1.0, maxval=1.0)

    params = build_sr_params(H, W, scale_factor)

    y = super_resolution_operator(x, params)
    jax.block_until_ready(y)

    # Pure-JAX reference replicating the original module semantics.
    r_h, r_w = params["r_h"], params["r_w"]
    x01 = (x + 1.0) / 2.0
    ref = jnp.einsum("oh,bchw->bcow", r_h, x01)
    ref = jnp.einsum("vw,bcow->bcov", r_w, ref)
    ref = (ref - 0.5) / 0.5

    assert y.shape == (B, C, params["h_out"], params["w_out"])
    np.testing.assert_allclose(np.asarray(y), np.asarray(ref), rtol=2e-5, atol=2e-5)

    print("KERNEL_OK")
</pallas_src>

<mosaic_0001>
module attributes {stable_mosaic.version = 11 : i64} {
  func.func @_resize_kernel(%arg0: i32, %arg1: memref<8x256xf32, #tpu.memory_space<vmem>>, %arg2: memref<256x128xf32, #tpu.memory_space<vmem>>, %arg3: memref<8x128xf32, #tpu.memory_space<vmem>>) attributes {dimension_semantics = [#tpu.dimension_semantics<parallel>], iteration_bounds = array<i64: 1>, scalar_prefetch = 0 : i64, scratch_operands = 0 : i64, tpu.core_type = #tpu.core_type<tc>, window_params = [{transform_indices = @transform_0, window_bounds = array<i64: 8, 256>}, {pipeline_mode = #tpu.pipeline_mode<synchronous>, transform_indices = @transform_1, window_bounds = array<i64: 256, 128>}, {transform_indices = @transform_2, window_bounds = array<i64: 8, 128>}]} {
    %c0 = arith.constant 0 : index
    %c0_0 = arith.constant 0 : index
    %0 = vector.load %arg1[%c0, %c0_0] : memref<8x256xf32, #tpu.memory_space<vmem>>, vector<8x256xf32>
    %c0_1 = arith.constant 0 : index
    %c0_2 = arith.constant 0 : index
    %1 = vector.load %arg2[%c0_1, %c0_2] : memref<256x128xf32, #tpu.memory_space<vmem>>, vector<256x128xf32>
    %cst = arith.constant dense<0.000000e+00> : vector<8x128xf32>
    %2 = tpu.matmul %0, %1, %cst {dimension_numbers = #tpu.dot_dimension_numbers<[1], [0], [0], [1], [0, 0, 1, 1], [], []>} : vector<8x256xf32>, vector<256x128xf32>, vector<8x128xf32> -> vector<8x128xf32>
    %c0_3 = arith.constant 0 : index
    %c0_4 = arith.constant 0 : index
    %3 = vector.load %arg3[%c0_3, %c0_4] : memref<8x128xf32, #tpu.memory_space<vmem>>, vector<8x128xf32>
    tpu.vector_store %arg3[%c0_3, %c0_4], %2 {strides = array<i32>} : memref<8x128xf32, #tpu.memory_space<vmem>>, vector<8x128xf32>,
    return
  }
  func.func @transform_0(%arg0: i32) -> (i32, i32) {
    %c0_i32 = arith.constant 0 : i32
    %c0_i32_0 = arith.constant 0 : i32
    return %arg0, %c0_i32 : i32, i32
  }
  func.func @transform_1(%arg0: i32) -> (i32, i32) {
    %c0_i32 = arith.constant 0 : i32
    %c0_i32_0 = arith.constant 0 : i32
    %c0_i32_1 = arith.constant 0 : i32
    return %c0_i32, %c0_i32_0 : i32, i32
  }
  func.func @transform_2(%arg0: i32) -> (i32, i32) {
    %c0_i32 = arith.constant 0 : i32
    %c0_i32_0 = arith.constant 0 : i32
    return %arg0, %c0_i32 : i32, i32
  }
}

</mosaic_0001>

<bundles_post_ra>
// kernel: tpu_custom_call.1
= control target key start
LH: loop header
LB: loop body
LE: loop exit
PB: predicated region body
PF: predicated region fallthrough
CT: control target
= control target key end

     0   :  { %7 = vsyncpa [#allocation3], 0  ;;  %s294_s0 = inlined_call_operand.hbm [shape: f32[8,256], index: 0, kind: input, shape index: {}]   ;;  %s295_s1 = inlined_call_operand.hbm [shape: f32[256,128], index: 1, kind: input, shape index: {}]   ;;  %s296_s2 = inlined_call_operand.hbm [shape: f32[8,128], index: 2, kind: output, shape index: {}]  }
   0x1   :  { %8 = vsyncpa [#allocation6], 0 }
   0x2   :  { %9 = vsyncpa [#allocation4], 0  ;;  %s265_s9 = smov [#allocation2]   ;;  %s266_s11 = smov [#allocation5]  }
   0x3   :  { %s16_s10 = sshll.u32 %s265_s9, 4  ;;  %s25_s12 = sshll.u32 %s266_s11, 4  ;;  %s17_s10 = int_to_ptr.vmem [resolvable:$true] %s16_s10  ;;  %s26_s12 = int_to_ptr.vmem [resolvable:$true] %s25_s12 }
   0x4   :  { %s207_s13 = scalar_lea.vmem %s17_s10, 256  ;;  %p212_p1 = scmp.lt.s32.totalorder %s17_s10, %s17_s10 }
   0x5   :  { %p208_p0 = scmp.ne.s32.totalorder %s17_s10, %s207_s13  ;;  %p213_p2 = scmp.lt.s32.totalorder %s207_s13, %s207_s13 }
   0x7   :  { %p214_p3 = por %p213_p2, %p212_p1 }
   0x9   :  { %p215_p4 = pnand %p214_p3, %p208_p0 }
   0xb   :  { %218 = shalt.err (!%p215_p4)
}
   0xc   :  { %19 = dma.hbm_to_vmem [thread:$0]  %s294_s0, 256, %s17_s10, [#allocation3]  }
   0xd   :  { %s227_s16 = scalar_lea.vmem %s26_s12, 4096  ;;  %p232_p6 = scmp.lt.s32.totalorder %s26_s12, %s26_s12 }
   0xe   :  { %p228_p5 = scmp.ne.s32.totalorder %s26_s12, %s227_s16  ;;  %p233_p7 = scmp.lt.s32.totalorder %s227_s16, %s227_s16 }
  0x10   :  { %p234_p8 = por %p233_p7, %p232_p6 }
  0x12   :  { %p235_p9 = pnand %p234_p8, %p228_p5 }
  0x14   :  { %238 = shalt.err (!%p235_p9)
}
  0x15   :  { %s267_s17 = smov 128   ;;  %s268_s18 = smov 8  }
  0x16   :  { %31 = dma.hbm_to_vmem [thread:$0]  %s295_s1, 4096, %s26_s12, [#allocation6], %s267_s17, %s267_s17, %s268_s18  }
  0x17   :  { %259 = dma.done.wait [#allocation3], 256  }
  0x18   :  { %260 = vsyncadd [#allocation3], 4294967040 }
  0x19   :  { %261 = dma.done.wait [#allocation6], 4096  }
  0x1a   :  { %262 = vsyncadd [#allocation6], 4294963200  ;;  %v71_v0 = vld [vmem:[#allocation5 + $0xf8] sm:$0xff]  ;;  %v70_v2 = vld [vmem:[#allocation5 + $0xf0] sm:$0xff]  ;;  %s269_s0 = smov [#allocation7]  }
  0x1b   :  { %v55_v1 = vld [vmem:[#allocation5 + $0x78] sm:$0xff]  ;;  %159 = vmatprep.subr.mxu0 %v71_v0  ;;  %v54_v3 = vld [vmem:[#allocation5 + $0x70] sm:$0xff]  ;;  %v69_v4 = vld [vmem:[#allocation5 + $0xe8] sm:$0xff]  ;;  %s149_s1 = sshll.u32 %s269_s0, 4  ;;  %s150_s1 = int_to_ptr.vmem [resolvable:$true] %s149_s1 }
  0x1c   :  { %160 = vmatpush3.msra.mxu0 %v55_v1  ;;  %v53_v5 = vld [vmem:[#allocation5 + $0x68] sm:$0xff]  ;;  %v68_v6 = vld [vmem:[#allocation5 + $0xe0] sm:$0xff]  ;;  %v67_v8 = vld [vmem:[#allocation5 + $0xd8] sm:$0xff]  ;;  %s239_s21 = scalar_lea.vmem %s150_s1, 128  ;;  %p244_p11 = scmp.lt.s32.totalorder %s150_s1, %s150_s1 }
  0x1d   :  { %161 = vmatprep.subr.mxu0 %v70_v2  ;;  %v52_v7 = vld [vmem:[#allocation5 + $0x60] sm:$0xff]  ;;  %v51_v9 = vld [vmem:[#allocation5 + $0x58] sm:$0xff]  ;;  %v66_v10 = vld [vmem:[#allocation5 + $0xd0] sm:$0xff]  ;;  %p240_p10 = scmp.ne.s32.totalorder %s150_s1, %s239_s21  ;;  %p245_p12 = scmp.lt.s32.totalorder %s239_s21, %s239_s21 }
  0x1e   :  { %162 = vmatpush3.msra.mxu0 %v54_v3  ;;  %v50_v11 = vld [vmem:[#allocation5 + $0x50] sm:$0xff]  ;;  %v65_v12 = vld [vmem:[#allocation5 + $0xc8] sm:$0xff]  ;;  %v39_v13 = vld [vmem:[#allocation2 + $0x8] sm:$0xff] }
  0x1f   :  { %163 = vmatprep.subr.mxu0 %v69_v4  ;;  %v49_v14 = vld [vmem:[#allocation5 + $0x48] sm:$0xff]  ;;  %136 = vmatprep.mubr.f32.mxu0 %v39_v13  ;;  %v64_v15 = vld [vmem:[#allocation5 + $0xc0] sm:$0xff]  ;;  %v63_v17 = vld [vmem:[#allocation5 + $0xb8] sm:$0xff]  ;;  %p246_p13 = por %p245_p12, %p244_p11 }
  0x20   :  { %164 = vmatpush3.msra.mxu0 %v53_v5  ;;  %v48_v16 = vld [vmem:[#allocation5 + $0x40] sm:$0xff]  ;;  %v47_v18 = vld [vmem:[#allocation5 + $0x38] sm:$0xff]  ;;  %v62_v19 = vld [vmem:[#allocation5 + $0xb0] sm:$0xff] }
  0x21   :  { %165 = vmatprep.subr.mxu0 %v68_v6  ;;  %v46_v20 = vld [vmem:[#allocation5 + $0x30] sm:$0xff]  ;;  %v61_v21 = vld [vmem:[#allocation5 + $0xa8] sm:$0xff]  ;;  %v60_v23 = vld [vmem:[#allocation5 + $0xa0] sm:$0xff]  ;;  %p247_p0 = pnand %p246_p13, %p240_p10 }
  0x22   :  { %166 = vmatpush3.msra.mxu0 %v52_v7  ;;  %v45_v22 = vld [vmem:[#allocation5 + $0x28] sm:$0xff]  ;;  %v44_v24 = vld [vmem:[#allocation5 + $0x20] sm:$0xff]  ;;  %v59_v25 = vld [vmem:[#allocation5 + $0x98] sm:$0xff] }
  0x23   :  { %167 = vmatprep.subr.mxu0 %v67_v8  ;;  %v43_v26 = vld [vmem:[#allocation5 + $0x18] sm:$0xff]  ;;  %v58_v27 = vld [vmem:[#allocation5 + $0x90] sm:$0xff]  ;;  %v57_v29 = vld [vmem:[#allocation5 + $0x88] sm:$0xff] }
  0x24   :  { %168 = vmatpush3.msra.mxu0 %v51_v9  ;;  %v42_v28 = vld [vmem:[#allocation5 + $0x10] sm:$0xff]  ;;  %v41_v30 = vld [vmem:[#allocation5 + $0x8] sm:$0xff]  ;;  %v56_v31 = vld [vmem:[#allocation5 + $0x80] sm:$0xff] }
  0x25   :  { %169 = vmatprep.subr.mxu0 %v66_v10  ;;  %v40_v32 = vld [vmem:[#allocation5] sm:$0xff]  ;;  %v38_v33 = vld [vmem:[#allocation2] sm:$0xff] }
  0x26   :  { %170 = vmatpush3.msra.mxu0 %v50_v11 }
  0x27   :  { %171 = vmatprep.subr.mxu0 %v65_v12 }
  0x28   :  { %172 = vmatpush3.msra.mxu0 %v49_v14 }
  0x29   :  { %173 = vmatprep.subr.mxu0 %v64_v15 }
  0x2a   :  { %174 = vmatpush3.msra.mxu0 %v48_v16 }
  0x2b   :  { %175 = vmatprep.subr.mxu0 %v63_v17 }
  0x2c   :  { %176 = vmatpush3.msra.mxu0 %v47_v18 }
  0x2d   :  { %177 = vmatprep.subr.mxu0 %v62_v19 }
  0x2e   :  { %178 = vmatpush3.msra.mxu0 %v46_v20 }
  0x2f   :  { %179 = vmatprep.subr.mxu0 %v61_v21 }
  0x30   :  { %180 = vmatpush3.msra.mxu0 %v45_v22 }
  0x31   :  { %181 = vmatprep.subr.mxu0 %v60_v23 }
  0x32   :  { %182 = vmatpush3.msra.mxu0 %v44_v24 }
  0x33   :  { %183 = vmatprep.subr.mxu0 %v59_v25 }
  0x34   :  { %184 = vmatpush3.msra.mxu0 %v43_v26 }
  0x35   :  { %185 = vmatprep.subr.mxu0 %v58_v27 }
  0x36   :  { %186 = vmatpush3.msra.mxu0 %v42_v28 }
  0x37   :  { %187 = vmatprep.subr.mxu0 %v57_v29 }
  0x38   :  { %188 = vmatpush3.msra.mxu0 %v41_v30 }
  0x39   :  { %189 = vmatprep.subr.mxu0 %v56_v31 }
  0x3a   :  { %190 = vmatpush3.msra.mxu0 %v40_v32 }
  0x3b   :  { %137 = vmatmul.mubr.f32.vlgmr.msra.gmra.mxu0 %v38_v33 }
  0xfb   :  { %v191_v34 = vpop.f32.mrf.mxu0 }
  0xfd   :  { %v192_v35 = vpop.f32.mrf.mxu0 }
  0xfe   :  { %v193_v36 = vadd.f32 %v192_v35, %v191_v34 }
 0x100   :  { %142 = vst [vmem:[#allocation7] sm:$0xff] %v193_v36 }
 0x101   :  { %250 = shalt.err (!%p247_p0)
}
 0x102   :  { %152 = dma.vmem_to_hbm [thread:$0]  %s150_s1, 128, %s296_s2, [#allocation4]  }
 0x103   :  { %263 = dma.done.wait [#allocation4], 128  }
 0x104   :  { %264 = vsyncadd [#allocation4], 4294967168 }
 0x105   :  { %156 = vsyncpa [#allocation3], 1 }
 0x106   :  { %157 = vsyncpa [#allocation6], 1 }
 0x107   :  { %158 = vsyncpa [#allocation4], 1 }

</bundles_post_ra>
